<compile_context>
chip_gen: v6e
topology: v6e:2x2x1
jax: 0.10.0
libtpu: 0.0.40
codegen_flags: <defaults>
</compile_context>

<pallas_src>
from math import prod

import jax
import jax.numpy as jnp
from jax import lax
from jax.experimental import pallas as pl


def _categorical_probs_kernel(x_ref, w_ref, b_ref, o_ref):
    """probs = softmax(x @ W.T + b), softmax over the last dim of out_size.

    x_ref: (B, K)     f32   activations
    w_ref: (G, L, K)  bf16  PyTorch nn.Linear weight (F, K) viewed as (G, L, K)
    b_ref: (G, 1, L)  f32   bias viewed per categorical group
    o_ref: (G, B, L)  f32   per-group class probabilities (softmax over L)
    """
    G, L, K = w_ref.shape
    B = x_ref.shape[0]

    # bf16 MXU inputs, f32 accumulate.
    x = x_ref[...].astype(jnp.bfloat16)
    xb = jnp.broadcast_to(x[None, :, :], (G, B, K))

    # Batched contraction over K (batch over groups G):
    # (G, B, K) x (G, L, K) -> (G, B, L); RHS keeps its PyTorch (out, in) order.
    z = lax.dot_general(
        xb, w_ref[...],
        dimension_numbers=(((2,), (2,)), ((0,), (0,))),
        preferred_element_type=jnp.float32,
    )
    z = z + b_ref[...]                                  # (G,1,L) broadcasts over B

    # Numerically-stable softmax over the class axis (== lane axis).
    z = z - jnp.max(z, axis=-1, keepdims=True)
    e = jnp.exp(z)
    o_ref[...] = (e / jnp.sum(e, axis=-1, keepdims=True)).astype(o_ref.dtype)


def categorical_probs(x, weight_grouped_bf16, bias, out_size):
    """Compute softmax(Linear(x)).view(B, *out_size) (softmax over last dim).

    x:                   (B, K) f32
    weight_grouped_bf16: (G, L, K) bf16 — PyTorch (F=G*L, K) weight, reshaped
                         (zero-copy) and cast to bf16 once at init time.
    bias:                (F,) f32
    """
    B, K = x.shape
    G, L, _ = weight_grouped_bf16.shape
    F = G * L
    assert prod(out_size) == F and tuple(out_size)[-1] == L

    b3 = bias.reshape(G, 1, L)  # metadata-only reshape

    cost = pl.CostEstimate(
        flops=2 * B * K * F + 6 * B * F,
        transcendentals=B * F,
        bytes_accessed=x.size * 4 + weight_grouped_bf16.size * 2
        + bias.size * 4 + B * F * 4,
    )

    out = pl.pallas_call(
        _categorical_probs_kernel,
        out_shape=jax.ShapeDtypeStruct((G, B, L), jnp.float32),
        in_specs=[
            pl.BlockSpec((B, K), lambda: (0, 0)),
            pl.BlockSpec((G, L, K), lambda: (0, 0, 0)),
            pl.BlockSpec((G, 1, L), lambda: (0, 0, 0)),
        ],
        out_specs=pl.BlockSpec((G, B, L), lambda: (0, 0, 0)),
        cost_estimate=cost,
    )(x, weight_grouped_bf16, b3)

    # (G,B,L) -> (B,G,L) -> (B, *out_size); tiny and fused by XLA downstream.
    return jnp.transpose(out, (1, 0, 2)).reshape((B,) + tuple(out_size))


if __name__ == "__main__":
    key = jax.random.PRNGKey(0)
    k_x, k_w, k_b = jax.random.split(key, 3)

    B = 8                     # multiple of 8: sublane-aligned output tile
    in_dim = 32
    out_size = (8, 128)       # 8 categorical variables x 128 classes (F = 1024)
    temp = 0.5                # distribution temperature; does not affect `probs`
    F = prod(out_size)
    L = out_size[-1]
    G = F // L

    # PyTorch nn.Linear default init: U(-1/sqrt(in), 1/sqrt(in))
    bound = 1.0 / (in_dim ** 0.5)
    weight = jax.random.uniform(k_w, (F, in_dim), jnp.float32,
                                minval=-bound, maxval=bound)
    bias = jax.random.uniform(k_b, (F,), jnp.float32,
                              minval=-bound, maxval=bound)
    x = jax.random.normal(k_x, (B, in_dim), jnp.float32)

    # Parameter storage format (done once, "at init"): grouped view + bf16.
    w_param = weight.reshape(G, L, in_dim).astype(jnp.bfloat16)

    probs = categorical_probs(x, w_param, bias, out_size)
    probs = jax.block_until_ready(probs)

    # Reference in plain f32 JAX (PyTorch semantics: Linear -> View -> Softmax(-1)).
    ref = jax.nn.softmax((x @ weight.T + bias).reshape((B,) + out_size), axis=-1)
    assert probs.shape == (B,) + out_size
    assert jnp.allclose(jnp.sum(probs, axis=-1), 1.0, atol=1e-4)
    # bf16 weight/activation path vs f32 reference -> loosened tolerance.
    assert jnp.allclose(probs, ref, atol=2e-3, rtol=2e-2)

    # TODO(synk): torch.distributions.RelaxedOneHotCategorical (and its `temp`)
    # has no Pallas equivalent; the kernel returns its `probs` parameter only.
    print("KERNEL_OK")
</pallas_src>

<mosaic_0001>
module attributes {stable_mosaic.version = 11 : i64} {
  func.func @_categorical_probs_kernel(%arg0: memref<8x32xf32, #tpu.memory_space<vmem>>, %arg1: memref<8x128x32xbf16, #tpu.memory_space<vmem>>, %arg2: memref<8x1x128xf32, #tpu.memory_space<vmem>>, %arg3: memref<8x8x128xf32, #tpu.memory_space<vmem>>) attributes {dimension_semantics = [], scalar_prefetch = 0 : i64, scratch_operands = 0 : i64, tpu.core_type = #tpu.core_type<tc>} {
    %c0 = arith.constant 0 : index
    %c0_0 = arith.constant 0 : index
    %0 = vector.load %arg0[%c0, %c0_0] : memref<8x32xf32, #tpu.memory_space<vmem>>, vector<8x32xf32>
    %1 = arith.truncf %0 : vector<8x32xf32> to vector<8x32xbf16>
    %2 = vector.shape_cast %1 : vector<8x32xbf16> to vector<1x8x32xbf16>
    %3 = vector.shape_cast %2 : vector<1x8x32xbf16> to vector<1x8x32xbf16>
    %4 = vector.broadcast %3 : vector<1x8x32xbf16> to vector<8x8x32xbf16>
    %c0_1 = arith.constant 0 : index
    %c0_2 = arith.constant 0 : index
    %c0_3 = arith.constant 0 : index
    %5 = vector.load %arg1[%c0_1, %c0_2, %c0_3] : memref<8x128x32xbf16, #tpu.memory_space<vmem>>, vector<8x128x32xbf16>
    %cst = arith.constant dense<0.000000e+00> : vector<8x8x128xf32>
    %6 = tpu.matmul %4, %5, %cst {dimension_numbers = #tpu.dot_dimension_numbers<[2], [2], [1], [1], [0, 0, 0, 1, 1, 1], [0], [0]>} : vector<8x8x32xbf16>, vector<8x128x32xbf16>, vector<8x8x128xf32> -> vector<8x8x128xf32>
    %c0_4 = arith.constant 0 : index
    %c0_5 = arith.constant 0 : index
    %c0_6 = arith.constant 0 : index
    %7 = vector.load %arg2[%c0_4, %c0_5, %c0_6] : memref<8x1x128xf32, #tpu.memory_space<vmem>>, vector<8x1x128xf32>
    %8 = vector.broadcast %7 : vector<8x1x128xf32> to vector<8x8x128xf32>
    %9 = arith.addf %6, %8 : vector<8x8x128xf32>
    %cst_7 = arith.constant dense<0xFF800000> : vector<8x8xf32>
    %10 = vector.multi_reduction <maximumf>, %9, %cst_7 [2] : vector<8x8x128xf32> to vector<8x8xf32>
    %11 = vector.shape_cast %10 : vector<8x8xf32> to vector<8x8x1xf32>
    %12 = vector.broadcast %11 : vector<8x8x1xf32> to vector<8x8x128xf32>
    %13 = arith.subf %9, %12 : vector<8x8x128xf32>
    %14 = math.exp %13 : vector<8x8x128xf32>
    %cst_8 = arith.constant dense<0.000000e+00> : vector<8x8xf32>
    %15 = vector.multi_reduction <add>, %14, %cst_8 [2] : vector<8x8x128xf32> to vector<8x8xf32>
    %16 = vector.shape_cast %15 : vector<8x8xf32> to vector<8x8x1xf32>
    %17 = vector.broadcast %16 : vector<8x8x1xf32> to vector<8x8x128xf32>
    %18 = arith.divf %14, %17 : vector<8x8x128xf32>
    %c0_9 = arith.constant 0 : index
    %c0_10 = arith.constant 0 : index
    %c0_11 = arith.constant 0 : index
    %19 = vector.load %arg3[%c0_9, %c0_10, %c0_11] : memref<8x8x128xf32, #tpu.memory_space<vmem>>, vector<8x8x128xf32>
    tpu.vector_store %arg3[%c0_9, %c0_10, %c0_11], %18 {strides = array<i32>} : memref<8x8x128xf32, #tpu.memory_space<vmem>>, vector<8x8x128xf32>,
    return
  }
}

</mosaic_0001>

<bundles_post_ra>
// kernel: tpu_custom_call.1
= control target key start
LH: loop header
LB: loop body
LE: loop exit
PB: predicated region body
PF: predicated region fallthrough
CT: control target
= control target key end

     0   :  { %v1569_v1 = vmov 0.0   ;;  %vm242_vm0 = vcmask 261120   ;;  %vm1570_vm1 = vmmov 0   ;;  %s1978_s0 = inlined_call_operand.vmem [shape: f32[8,32], index: 0, kind: input, shape index: {}]   ;;  %s1979_s1 = inlined_call_operand.vmem [shape: bf16[8,128,32], index: 1, kind: input, shape index: {}]   ;;  %s1980_s2 = inlined_call_operand.vmem [shape: f32[8,1,128], index: 2, kind: input, shape index: {}]   ;;  %s1981_s3 = inlined_call_operand.hbm [shape: f32[8,8,128], index: 3, kind: output, shape index: {}]  }
   0x1   :  { %v1451_v0 = vld [vmem:[%s1979_s1 + $0x38] sm:$0xff]   ;;  %1286 = vmatprep.subr.bf16.mxu0 %v1569_v1  ;;  %1306 = vmatprep.subr.bf16.mxu1 %v1569_v1  ;;  %v1453_v5 = vld [vmem:[%s1979_s1 + $0x30] sm:$0xff]   ;;  %v1455_v9 = vld [vmem:[%s1979_s1 + $0x28] sm:$0xff]  }
   0x2   :  { %v1452_v2 = vld [vmem:[%s1979_s1 + $0x78] sm:$0xff]   ;;  %v268_v3 = vsel %vm242_vm0, %v1451_v0, 0  ;;  %v1454_v6 = vld [vmem:[%s1979_s1 + $0x70] sm:$0xff]   ;;  %v265_v7 = vsel %vm242_vm0, %v1453_v5, 0  ;;  %v1456_v10 = vld [vmem:[%s1979_s1 + $0x68] sm:$0xff]   ;;  %v262_v11 = vsel %vm242_vm0, %v1455_v9, 0  ;;  %1302 = vmatprep.mubr.msk.bf16.mxu0 %vm1570_vm1, %v1569_v1  ;;  %1322 = vmatprep.mubr.msk.bf16.mxu1 %vm1570_vm1, %v1569_v1 }
   0x3   :  { %1287 = vmatpush3.bf16.xpose.msra.mxu0 %v268_v3  ;;  %v372_v4 = vsel %vm242_vm0, %v1452_v2, 0  ;;  %v369_v8 = vsel %vm242_vm0, %v1454_v6, 0  ;;  %v366_v12 = vsel %vm242_vm0, %v1456_v10, 0  ;;  %v1457_v13 = vld [vmem:[%s1979_s1 + $0x20] sm:$0xff]   ;;  %v1459_v17 = vld [vmem:[%s1979_s1 + $0x18] sm:$0xff]   ;;  %v1461_v21 = vld [vmem:[%s1979_s1 + $0x10] sm:$0xff]  }
   0x4   :  { %1307 = vmatpush3.bf16.xpose.msra.mxu1 %v372_v4  ;;  %1288 = vmatprep.subr.bf16.mxu0 %v1569_v1  ;;  %v1458_v14 = vld [vmem:[%s1979_s1 + $0x60] sm:$0xff]   ;;  %v259_v15 = vsel %vm242_vm0, %v1457_v13, 0  ;;  %v1460_v18 = vld [vmem:[%s1979_s1 + $0x58] sm:$0xff]   ;;  %v256_v19 = vsel %vm242_vm0, %v1459_v17, 0  ;;  %v1462_v22 = vld [vmem:[%s1979_s1 + $0x50] sm:$0xff]   ;;  %v253_v23 = vsel %vm242_vm0, %v1461_v21, 0 }
   0x5   :  { %1308 = vmatprep.subr.bf16.mxu1 %v1569_v1  ;;  %v363_v16 = vsel %vm242_vm0, %v1458_v14, 0  ;;  %v360_v20 = vsel %vm242_vm0, %v1460_v18, 0  ;;  %v357_v24 = vsel %vm242_vm0, %v1462_v22, 0  ;;  %v1463_v25 = vld [vmem:[%s1979_s1 + $0x8] sm:$0xff]   ;;  %v1465_v29 = vld [vmem:[%s1979_s1] sm:$0xff]   ;;  %v1467_v34 = vld [vmem:[%s1979_s1 + $0xb8] sm:$0xff]  }
   0x6   :  { %v1464_v26 = vld [vmem:[%s1979_s1 + $0x48] sm:$0xff]   ;;  %v250_v27 = vsel %vm242_vm0, %v1463_v25, 0  ;;  %v1466_v30 = vld [vmem:[%s1979_s1 + $0x40] sm:$0xff]   ;;  %v247_v31 = vsel %vm242_vm0, %v1465_v29, 0 }
   0x7   :  { %v354_v28 = vsel %vm242_vm0, %v1464_v26, 0  ;;  %v351_v32 = vsel %vm242_vm0, %v1466_v30, 0  ;;  %v16_v33 = vld [vmem:[%s1978_s0] sm:$0xff] }
   0xb   :  { %1289 = vmatpush3.bf16.xpose.msra.mxu0 %v265_v7 }
   0xc   :  { %1309 = vmatpush3.bf16.xpose.msra.mxu1 %v369_v8  ;;  %1290 = vmatprep.subr.bf16.mxu0 %v1569_v1 }
   0xd   :  { %1310 = vmatprep.subr.bf16.mxu1 %v1569_v1 }
  0x13   :  { %1291 = vmatpush3.bf16.xpose.msra.mxu0 %v262_v11 }
  0x14   :  { %1311 = vmatpush3.bf16.xpose.msra.mxu1 %v366_v12  ;;  %1292 = vmatprep.subr.bf16.mxu0 %v1569_v1 }
  0x15   :  { %1312 = vmatprep.subr.bf16.mxu1 %v1569_v1 }
  0x1b   :  { %1293 = vmatpush3.bf16.xpose.msra.mxu0 %v259_v15 }
  0x1c   :  { %1313 = vmatpush3.bf16.xpose.msra.mxu1 %v363_v16  ;;  %1294 = vmatprep.subr.bf16.mxu0 %v1569_v1 }
  0x1d   :  { %1314 = vmatprep.subr.bf16.mxu1 %v1569_v1 }
  0x23   :  { %1295 = vmatpush3.bf16.xpose.msra.mxu0 %v256_v19 }
  0x24   :  { %1315 = vmatpush3.bf16.xpose.msra.mxu1 %v360_v20  ;;  %1296 = vmatprep.subr.bf16.mxu0 %v1569_v1 }
  0x25   :  { %1316 = vmatprep.subr.bf16.mxu1 %v1569_v1 }
  0x2b   :  { %1297 = vmatpush3.bf16.xpose.msra.mxu0 %v253_v23 }
  0x2c   :  { %1317 = vmatpush3.bf16.xpose.msra.mxu1 %v357_v24  ;;  %1298 = vmatprep.subr.bf16.mxu0 %v1569_v1 }
  0x2d   :  { %1318 = vmatprep.subr.bf16.mxu1 %v1569_v1 }
  0x33   :  { %1299 = vmatpush3.bf16.xpose.msra.mxu0 %v250_v27 }
  0x34   :  { %1319 = vmatpush3.bf16.xpose.msra.mxu1 %v354_v28  ;;  %1300 = vmatprep.subr.bf16.mxu0 %v1569_v1 }
  0x35   :  { %1320 = vmatprep.subr.bf16.mxu1 %v1569_v1 }
  0x3b   :  { %1301 = vmatpush3.bf16.xpose.msra.mxu0 %v247_v31 }
  0x3c   :  { %1321 = vmatpush3.bf16.xpose.msra.mxu1 %v351_v32  ;;  %1326 = vmatprep.subr.bf16.mxu0 %v1569_v1 }
  0x3d   :  { %8 = vsyncpa [#allocation3], 0  ;;  %1346 = vmatprep.subr.bf16.mxu1 %v1569_v1  ;;  %v1468_v35 = vld [vmem:[%s1979_s1 + $0xf8] sm:$0xff]   ;;  %v1689_v36 = vpack.c.bf16 %v16_v33, %v16_v33  ;;  %v476_v37 = vsel %vm242_vm0, %v1467_v34, 0  ;;  %v1469_v39 = vld [vmem:[%s1979_s1 + $0xb0] sm:$0xff]  }
  0x3e   :  { %v580_v38 = vsel %vm242_vm0, %v1468_v35, 0  ;;  %v1470_v40 = vld [vmem:[%s1979_s1 + $0xf0] sm:$0xff]   ;;  %v473_v41 = vsel %vm242_vm0, %v1469_v39, 0  ;;  %v1471_v43 = vld [vmem:[%s1979_s1 + $0xa8] sm:$0xff]   ;;  %v1473_v47 = vld [vmem:[%s1979_s1 + $0xa0] sm:$0xff]  }
  0x3f   :  { %v577_v42 = vsel %vm242_vm0, %v1470_v40, 0  ;;  %v1472_v44 = vld [vmem:[%s1979_s1 + $0xe8] sm:$0xff]   ;;  %v470_v45 = vsel %vm242_vm0, %v1471_v43, 0  ;;  %v1474_v48 = vld [vmem:[%s1979_s1 + $0xe0] sm:$0xff]   ;;  %v467_v49 = vsel %vm242_vm0, %v1473_v47, 0  ;;  %v1475_v51 = vld [vmem:[%s1979_s1 + $0x98] sm:$0xff]  }
  0x40   :  { %v574_v46 = vsel %vm242_vm0, %v1472_v44, 0  ;;  %v571_v50 = vsel %vm242_vm0, %v1474_v48, 0  ;;  %v1476_v52 = vld [vmem:[%s1979_s1 + $0xd8] sm:$0xff]   ;;  %v464_v53 = vsel %vm242_vm0, %v1475_v51, 0  ;;  %v1477_v55 = vld [vmem:[%s1979_s1 + $0x90] sm:$0xff]   ;;  %v1479_v59 = vld [vmem:[%s1979_s1 + $0x88] sm:$0xff]  }
  0x41   :  { %v568_v54 = vsel %vm242_vm0, %v1476_v52, 0  ;;  %v1478_v56 = vld [vmem:[%s1979_s1 + $0xd0] sm:$0xff]   ;;  %v461_v57 = vsel %vm242_vm0, %v1477_v55, 0  ;;  %v1480_v60 = vld [vmem:[%s1979_s1 + $0xc8] sm:$0xff]   ;;  %v458_v61 = vsel %vm242_vm0, %v1479_v59, 0  ;;  %v1481_v63 = vld [vmem:[%s1979_s1 + $0x80] sm:$0xff]  }
  0x42   :  { %1303 = vmatmul.mubr.msk.bf16.vlgmr.msra.gmra.mxu0 %vm242_vm0, %v1689_v36  ;;  %v565_v58 = vsel %vm242_vm0, %v1478_v56, 0  ;;  %v562_v62 = vsel %vm242_vm0, %v1480_v60, 0  ;;  %v1482_v0 = vld [vmem:[%s1979_s1 + $0xc0] sm:$0xff]   ;;  %v455_v2 = vsel %vm242_vm0, %v1481_v63, 0  ;;  %v1483_v4 = vld [vmem:[%s1979_s1 + $0x138] sm:$0xff]   ;;  %v1485_v8 = vld [vmem:[%s1979_s1 + $0x130] sm:$0xff]  }
  0x43   :  { %1323 = vmatmul.mubr.msk.bf16.vlgmr.msra.gmra.mxu1 %vm242_vm0, %v1689_v36  ;;  %1327 = vmatpush3.bf16.xpose.msra.mxu0 %v476_v37  ;;  %v559_v3 = vsel %vm242_vm0, %v1482_v0, 0  ;;  %v1484_v5 = vld [vmem:[%s1979_s1 + $0x178] sm:$0xff]   ;;  %v684_v6 = vsel %vm242_vm0, %v1483_v4, 0  ;;  %v1486_v9 = vld [vmem:[%s1979_s1 + $0x170] sm:$0xff]   ;;  %v681_v10 = vsel %vm242_vm0, %v1485_v8, 0  ;;  %v1487_v12 = vld [vmem:[%s1979_s1 + $0x128] sm:$0xff]  }
  0x44   :  { %1347 = vmatpush3.bf16.xpose.msra.mxu1 %v580_v38  ;;  %1328 = vmatprep.subr.bf16.mxu0 %v1569_v1  ;;  %v788_v7 = vsel %vm242_vm0, %v1484_v5, 0  ;;  %v785_v11 = vsel %vm242_vm0, %v1486_v9, 0  ;;  %v1488_v13 = vld [vmem:[%s1979_s1 + $0x168] sm:$0xff]   ;;  %v678_v14 = vsel %vm242_vm0, %v1487_v12, 0  ;;  %v1489_v16 = vld [vmem:[%s1979_s1 + $0x120] sm:$0xff]   ;;  %v1491_v20 = vld [vmem:[%s1979_s1 + $0x118] sm:$0xff]  }
  0x45   :  { %1348 = vmatprep.subr.bf16.mxu1 %v1569_v1  ;;  %1342 = vmatprep.mubr.msk.bf16.mxu0 %vm1570_vm1, %v1569_v1  ;;  %v782_v15 = vsel %vm242_vm0, %v1488_v13, 0  ;;  %v1490_v17 = vld [vmem:[%s1979_s1 + $0x160] sm:$0xff]   ;;  %v675_v18 = vsel %vm242_vm0, %v1489_v16, 0  ;;  %v1492_v21 = vld [vmem:[%s1979_s1 + $0x158] sm:$0xff]   ;;  %v672_v22 = vsel %vm242_vm0, %v1491_v20, 0  ;;  %v1493_v24 = vld [vmem:[%s1979_s1 + $0x110] sm:$0xff]  }
  0x46   :  { %1362 = vmatprep.mubr.msk.bf16.mxu1 %vm1570_vm1, %v1569_v1  ;;  %v779_v19 = vsel %vm242_vm0, %v1490_v17, 0  ;;  %v776_v23 = vsel %vm242_vm0, %v1492_v21, 0  ;;  %v1494_v25 = vld [vmem:[%s1979_s1 + $0x150] sm:$0xff]   ;;  %v669_v26 = vsel %vm242_vm0, %v1493_v24, 0  ;;  %v1495_v28 = vld [vmem:[%s1979_s1 + $0x108] sm:$0xff]   ;;  %v1497_v32 = vld [vmem:[%s1979_s1 + $0x100] sm:$0xff]  }
  0x47   :  { %v773_v27 = vsel %vm242_vm0, %v1494_v25, 0  ;;  %v1496_v29 = vld [vmem:[%s1979_s1 + $0x148] sm:$0xff]   ;;  %v666_v30 = vsel %vm242_vm0, %v1495_v28, 0  ;;  %v1498_v33 = vld [vmem:[%s1979_s1 + $0x140] sm:$0xff]   ;;  %v663_v34 = vsel %vm242_vm0, %v1497_v32, 0  ;;  %v1499_v37 = vld [vmem:[%s1979_s1 + $0x1b8] sm:$0xff]  }
  0x48   :  { %v770_v31 = vsel %vm242_vm0, %v1496_v29, 0  ;;  %v767_v35 = vsel %vm242_vm0, %v1498_v33, 0  ;;  %v1500_v38 = vld [vmem:[%s1979_s1 + $0x1f8] sm:$0xff]   ;;  %v892_v39 = vsel %vm242_vm0, %v1499_v37, 0  ;;  %v1135_v9 = vld [vmem:[%s1980_s2 + $0x1] ss:$0 sm:$0xff] }
  0x49   :  { %v996_v40 = vsel %vm242_vm0, %v1500_v38, 0  ;;  %v1136_v17 = vld [vmem:[%s1980_s2 + $0x2] ss:$0 sm:$0xff]  ;;  %v1137_v20 = vld [vmem:[%s1980_s2 + $0x3] ss:$0 sm:$0xff] }
  0x4a   :  { %v1138_v28 = vld [vmem:[%s1980_s2 + $0x4] ss:$0 sm:$0xff]  ;;  %v1139_v29 = vld [vmem:[%s1980_s2 + $0x5] ss:$0 sm:$0xff] }
  0x4b   :  { %1329 = vmatpush3.bf16.xpose.msra.mxu0 %v473_v41  ;;  %v1501_v41 = vld [vmem:[%s1979_s1 + $0x1b0] sm:$0xff]  }
  0x4c   :  { %1349 = vmatpush3.bf16.xpose.msra.mxu1 %v577_v42  ;;  %1330 = vmatprep.subr.bf16.mxu0 %v1569_v1  ;;  %v1502_v42 = vld [vmem:[%s1979_s1 + $0x1f0] sm:$0xff]   ;;  %v889_v43 = vsel %vm242_vm0, %v1501_v41, 0 }
  0x4d   :  { %1350 = vmatprep.subr.bf16.mxu1 %v1569_v1  ;;  %v993_v44 = vsel %vm242_vm0, %v1502_v42, 0 }
  0x53   :  { %1331 = vmatpush3.bf16.xpose.msra.mxu0 %v470_v45  ;;  %v1503_v45 = vld [vmem:[%s1979_s1 + $0x1a8] sm:$0xff]  }
  0x54   :  { %1351 = vmatpush3.bf16.xpose.msra.mxu1 %v574_v46  ;;  %1332 = vmatprep.subr.bf16.mxu0 %v1569_v1  ;;  %v1504_v46 = vld [vmem:[%s1979_s1 + $0x1e8] sm:$0xff]   ;;  %v886_v47 = vsel %vm242_vm0, %v1503_v45, 0 }
  0x55   :  { %1352 = vmatprep.subr.bf16.mxu1 %v1569_v1  ;;  %v990_v48 = vsel %vm242_vm0, %v1504_v46, 0 }
  0x5b   :  { %1333 = vmatpush3.bf16.xpose.msra.mxu0 %v467_v49  ;;  %v1505_v49 = vld [vmem:[%s1979_s1 + $0x1a0] sm:$0xff]  }
  0x5c   :  { %1353 = vmatpush3.bf16.xpose.msra.mxu1 %v571_v50  ;;  %1334 = vmatprep.subr.bf16.mxu0 %v1569_v1  ;;  %v1506_v50 = vld [vmem:[%s1979_s1 + $0x1e0] sm:$0xff]   ;;  %v883_v51 = vsel %vm242_vm0, %v1505_v49, 0 }
  0x5d   :  { %1354 = vmatprep.subr.bf16.mxu1 %v1569_v1  ;;  %v987_v52 = vsel %vm242_vm0, %v1506_v50, 0 }
  0x63   :  { %1335 = vmatpush3.bf16.xpose.msra.mxu0 %v464_v53  ;;  %v1507_v53 = vld [vmem:[%s1979_s1 + $0x198] sm:$0xff]  }
  0x64   :  { %1355 = vmatpush3.bf16.xpose.msra.mxu1 %v568_v54  ;;  %1336 = vmatprep.subr.bf16.mxu0 %v1569_v1  ;;  %v1508_v54 = vld [vmem:[%s1979_s1 + $0x1d8] sm:$0xff]   ;;  %v880_v55 = vsel %vm242_vm0, %v1507_v53, 0 }
  0x65   :  { %1356 = vmatprep.subr.bf16.mxu1 %v1569_v1  ;;  %v984_v56 = vsel %vm242_vm0, %v1508_v54, 0 }
  0x6b   :  { %1337 = vmatpush3.bf16.xpose.msra.mxu0 %v461_v57  ;;  %v1509_v57 = vld [vmem:[%s1979_s1 + $0x190] sm:$0xff]  }
  0x6c   :  { %1357 = vmatpush3.bf16.xpose.msra.mxu1 %v565_v58  ;;  %1338 = vmatprep.subr.bf16.mxu0 %v1569_v1  ;;  %v1510_v58 = vld [vmem:[%s1979_s1 + $0x1d0] sm:$0xff]   ;;  %v877_v59 = vsel %vm242_vm0, %v1509_v57, 0 }
  0x6d   :  { %1358 = vmatprep.subr.bf16.mxu1 %v1569_v1  ;;  %v981_v60 = vsel %vm242_vm0, %v1510_v58, 0 }
  0x73   :  { %1339 = vmatpush3.bf16.xpose.msra.mxu0 %v458_v61  ;;  %v1511_v61 = vld [vmem:[%s1979_s1 + $0x188] sm:$0xff]  }
  0x74   :  { %1359 = vmatpush3.bf16.xpose.msra.mxu1 %v562_v62  ;;  %1340 = vmatprep.subr.bf16.mxu0 %v1569_v1  ;;  %v1512_v62 = vld [vmem:[%s1979_s1 + $0x1c8] sm:$0xff]   ;;  %v874_v63 = vsel %vm242_vm0, %v1511_v61, 0 }
  0x75   :  { %1360 = vmatprep.subr.bf16.mxu1 %v1569_v1  ;;  %v978_v0 = vsel %vm242_vm0, %v1512_v62, 0 }
  0x7b   :  { %1341 = vmatpush3.bf16.xpose.msra.mxu0 %v455_v2  ;;  %v1513_v2 = vld [vmem:[%s1979_s1 + $0x180] sm:$0xff]  }
  0x7c   :  { %1361 = vmatpush3.bf16.xpose.msra.mxu1 %v559_v3  ;;  %1366 = vmatprep.subr.bf16.mxu0 %v1569_v1  ;;  %v1514_v3 = vld [vmem:[%s1979_s1 + $0x1c0] sm:$0xff]   ;;  %v871_v4 = vsel %vm242_vm0, %v1513_v2, 0 }
  0x7d   :  { %1386 = vmatprep.subr.bf16.mxu1 %v1569_v1  ;;  %v975_v5 = vsel %vm242_vm0, %v1514_v3, 0 }
  0x82   :  { %1343 = vmatmul.mubr.msk.bf16.vlgmr.msra.gmra.mxu0 %vm242_vm0, %v1689_v36 }
  0x83   :  { %1363 = vmatmul.mubr.msk.bf16.vlgmr.msra.gmra.mxu1 %vm242_vm0, %v1689_v36  ;;  %1367 = vmatpush3.bf16.xpose.msra.mxu0 %v684_v6  ;;  %v1134_v6 = vld [vmem:[%s1980_s2] ss:$0 sm:$0xff] }
  0x84   :  { %1387 = vmatpush3.bf16.xpose.msra.mxu1 %v788_v7  ;;  %1368 = vmatprep.subr.bf16.mxu0 %v1569_v1 }
  0x85   :  { %1388 = vmatprep.subr.bf16.mxu1 %v1569_v1  ;;  %1382 = vmatprep.mubr.msk.bf16.mxu0 %vm1570_vm1, %v1569_v1 }
  0x86   :  { %1402 = vmatprep.mubr.msk.bf16.mxu1 %vm1570_vm1, %v1569_v1 }
  0x8b   :  { %1369 = vmatpush3.bf16.xpose.msra.mxu0 %v681_v10 }
  0x8c   :  { %1389 = vmatpush3.bf16.xpose.msra.mxu1 %v785_v11  ;;  %1370 = vmatprep.subr.bf16.mxu0 %v1569_v1 }
  0x8d   :  { %1390 = vmatprep.subr.bf16.mxu1 %v1569_v1 }
  0x93   :  { %1371 = vmatpush3.bf16.xpose.msra.mxu0 %v678_v14 }
  0x94   :  { %1391 = vmatpush3.bf16.xpose.msra.mxu1 %v782_v15  ;;  %1372 = vmatprep.subr.bf16.mxu0 %v1569_v1 }
  0x95   :  { %1392 = vmatprep.subr.bf16.mxu1 %v1569_v1 }
  0x9b   :  { %1373 = vmatpush3.bf16.xpose.msra.mxu0 %v675_v18 }
  0x9c   :  { %1393 = vmatpush3.bf16.xpose.msra.mxu1 %v779_v19  ;;  %1374 = vmatprep.subr.bf16.mxu0 %v1569_v1 }
  0x9d   :  { %1394 = vmatprep.subr.bf16.mxu1 %v1569_v1 }
  0xa3   :  { %1375 = vmatpush3.bf16.xpose.msra.mxu0 %v672_v22 }
  0xa4   :  { %1395 = vmatpush3.bf16.xpose.msra.mxu1 %v776_v23  ;;  %1376 = vmatprep.subr.bf16.mxu0 %v1569_v1 }
  0xa5   :  { %1396 = vmatprep.subr.bf16.mxu1 %v1569_v1 }
  0xab   :  { %1377 = vmatpush3.bf16.xpose.msra.mxu0 %v669_v26 }
  0xac   :  { %1397 = vmatpush3.bf16.xpose.msra.mxu1 %v773_v27  ;;  %1378 = vmatprep.subr.bf16.mxu0 %v1569_v1 }
  0xad   :  { %1398 = vmatprep.subr.bf16.mxu1 %v1569_v1 }
  0xb3   :  { %1379 = vmatpush3.bf16.xpose.msra.mxu0 %v666_v30 }
  0xb4   :  { %1399 = vmatpush3.bf16.xpose.msra.mxu1 %v770_v31  ;;  %1380 = vmatprep.subr.bf16.mxu0 %v1569_v1 }
  0xb5   :  { %1400 = vmatprep.subr.bf16.mxu1 %v1569_v1 }
  0xbb   :  { %1381 = vmatpush3.bf16.xpose.msra.mxu0 %v663_v34 }
  0xbc   :  { %1401 = vmatpush3.bf16.xpose.msra.mxu1 %v767_v35  ;;  %1406 = vmatprep.subr.bf16.mxu0 %v1569_v1 }
  0xbd   :  { %1426 = vmatprep.subr.bf16.mxu1 %v1569_v1 }
  0xc2   :  { %1383 = vmatmul.mubr.msk.bf16.vlgmr.msra.gmra.mxu0 %vm242_vm0, %v1689_v36 }
  0xc3   :  { %1403 = vmatmul.mubr.msk.bf16.vlgmr.msra.gmra.mxu1 %vm242_vm0, %v1689_v36  ;;  %1407 = vmatpush3.bf16.xpose.msra.mxu0 %v892_v39 }
  0xc4   :  { %1427 = vmatpush3.bf16.xpose.msra.mxu1 %v996_v40  ;;  %1408 = vmatprep.subr.bf16.mxu0 %v1569_v1 }
  0xc5   :  { %1428 = vmatprep.subr.bf16.mxu1 %v1569_v1  ;;  %1422 = vmatprep.mubr.msk.bf16.mxu0 %vm1570_vm1, %v1569_v1 }
  0xc6   :  { %1442 = vmatprep.mubr.msk.bf16.mxu1 %vm1570_vm1, %v1569_v1 }
  0xcb   :  { %1409 = vmatpush3.bf16.xpose.msra.mxu0 %v889_v43 }
  0xcc   :  { %1429 = vmatpush3.bf16.xpose.msra.mxu1 %v993_v44  ;;  %1410 = vmatprep.subr.bf16.mxu0 %v1569_v1 }
  0xcd   :  { %1430 = vmatprep.subr.bf16.mxu1 %v1569_v1 }
  0xd3   :  { %1411 = vmatpush3.bf16.xpose.msra.mxu0 %v886_v47  ;;  %v1140_v47 = vld [vmem:[%s1980_s2 + $0x6] ss:$0 sm:$0xff] }
  0xd4   :  { %1431 = vmatpush3.bf16.xpose.msra.mxu1 %v990_v48  ;;  %1412 = vmatprep.subr.bf16.mxu0 %v1569_v1  ;;  %v1141_v48 = vld [vmem:[%s1980_s2 + $0x7] ss:$0 sm:$0xff]  ;;  %s1571_s2 = smov [#allocation2]  }
  0xd5   :  { %1432 = vmatprep.subr.bf16.mxu1 %v1569_v1  ;;  %s1123_s18 = sshll.u32 %s1571_s2, 4  ;;  %s1124_s18 = int_to_ptr.vmem [resolvable:$true] %s1123_s18 }
  0xd6   :  { %s1547_s19 = scalar_lea.vmem %s1124_s18, 1024  ;;  %p1552_p1 = scmp.lt.s32.totalorder %s1124_s18, %s1124_s18 }
  0xd7   :  { %p1548_p0 = scmp.ne.s32.totalorder %s1124_s18, %s1547_s19  ;;  %p1553_p2 = scmp.lt.s32.totalorder %s1547_s19, %s1547_s19 }
  0xd9   :  { %p1554_p3 = por %p1553_p2, %p1552_p1 }
  0xdb   :  { %1413 = vmatpush3.bf16.xpose.msra.mxu0 %v883_v51  ;;  %p1555_p4 = pnand %p1554_p3, %p1548_p0 }
  0xdc   :  { %1433 = vmatpush3.bf16.xpose.msra.mxu1 %v987_v52  ;;  %1414 = vmatprep.subr.bf16.mxu0 %v1569_v1 }
  0xdd   :  { %1434 = vmatprep.subr.bf16.mxu1 %v1569_v1 }
  0xe3   :  { %1415 = vmatpush3.bf16.xpose.msra.mxu0 %v880_v55 }
  0xe4   :  { %1435 = vmatpush3.bf16.xpose.msra.mxu1 %v984_v56  ;;  %1416 = vmatprep.subr.bf16.mxu0 %v1569_v1 }
  0xe5   :  { %1436 = vmatprep.subr.bf16.mxu1 %v1569_v1 }
  0xeb   :  { %1417 = vmatpush3.bf16.xpose.msra.mxu0 %v877_v59 }
  0xec   :  { %1437 = vmatpush3.bf16.xpose.msra.mxu1 %v981_v60  ;;  %1418 = vmatprep.subr.bf16.mxu0 %v1569_v1 }
  0xed   :  { %1438 = vmatprep.subr.bf16.mxu1 %v1569_v1 }
  0xf3   :  { %1419 = vmatpush3.bf16.xpose.msra.mxu0 %v874_v63 }
  0xf4   :  { %1439 = vmatpush3.bf16.xpose.msra.mxu1 %v978_v0  ;;  %1420 = vmatprep.subr.bf16.mxu0 %v1569_v1 }
  0xf5   :  { %1440 = vmatprep.subr.bf16.mxu1 %v1569_v1 }
  0xfb   :  { %1421 = vmatpush3.bf16.xpose.msra.mxu0 %v871_v4 }
  0xfc   :  { %1441 = vmatpush3.bf16.xpose.msra.mxu1 %v975_v5 }
 0x102   :  { %v304_v7 = vpop.f32.mrf.mxu0  ;;  %1423 = vmatmul.mubr.msk.bf16.vlgmr.msra.gmra.mxu0 %vm242_vm0, %v1689_v36 }
 0x103   :  { %v305_v8 = vadd.f32 %v1134_v6, %v304_v7  ;;  %v408_v1 = vpop.f32.mrf.mxu1  ;;  %1443 = vmatmul.mubr.msk.bf16.vlgmr.msra.gmra.mxu1 %vm242_vm0, %v1689_v36 }
 0x104   :  { %v1304_v10 = vpop.f32.mrf.mxu0  ;;  %v409_v13 = vadd.f32 %v1135_v9, %v408_v1 }
 0x105   :  { %v1324_v11 = vpop.f32.mrf.mxu1  ;;  %1038 = vmax.xlane.f32.xlu0 %v305_v8 }
 0x106   :  { %v307_v12 = vpop.f32.mrf.mxu0 }
 0x107   :  { %v411_v14 = vpop.f32.mrf.mxu1 }
 0x108   :  { %v1305_v15 = vpop.f32.mrf.mxu0 }
 0x109   :  { %v1325_v16 = vpop.f32.mrf.mxu1  ;;  %1040 = vmax.xlane.f32.xlu0 %v409_v13 }
 0x142   :  { %v512_v18 = vpop.f32.mrf.mxu0 }
 0x143   :  { %v513_v19 = vadd.f32 %v1136_v17, %v512_v18  ;;  %v616_v36 = vpop.f32.mrf.mxu1 }
 0x144   :  { %v1344_v21 = vpop.f32.mrf.mxu0  ;;  %v617_v24 = vadd.f32 %v1137_v20, %v616_v36 }
 0x145   :  { %v1364_v22 = vpop.f32.mrf.mxu1  ;;  %1042 = vmax.xlane.f32.xlu1 %v513_v19 }
 0x146   :  { %v515_v23 = vpop.f32.mrf.mxu0 }
 0x147   :  { %v619_v25 = vpop.f32.mrf.mxu1 }
 0x148   :  { %v1345_v26 = vpop.f32.mrf.mxu0 }
 0x149   :  { %v1365_v27 = vpop.f32.mrf.mxu1  ;;  %1044 = vmax.xlane.f32.xlu1 %v617_v24 }
 0x182   :  { %v720_v30 = vpop.f32.mrf.mxu0 }
 0x183   :  { %v721_v31 = vadd.f32 %v1138_v28, %v720_v30  ;;  %v824_v32 = vpop.f32.mrf.mxu1 }
 0x184   :  { %v825_v33 = vadd.f32 %v1139_v29, %v824_v32  ;;  %v1384_v34 = vpop.f32.mrf.mxu0 }
 0x185   :  { %v1404_v35 = vpop.f32.mrf.mxu1  ;;  %1046 = vmax.xlane.f32.xlu0 %v721_v31 }
 0x186   :  { %1048 = vmax.xlane.f32.xlu1 %v825_v33  ;;  %v723_v37 = vpop.f32.mrf.mxu0 }
 0x187   :  { %v827_v38 = vpop.f32.mrf.mxu1 }
 0x188   :  { %v1385_v39 = vpop.f32.mrf.mxu0 }
 0x189   :  { %v1405_v40 = vpop.f32.mrf.mxu1 }
 0x18e   :  { %v1039_v41 = vpop.xlane.xlu0 %1038 }
 0x18f   :  { %v1054_v43 = vsub.f32 %v305_v8, %v1039_v41 }
 0x191   :  { %v1062_v45 = vmul.f32 1.442695, %v1054_v43 }
 0x192   :  { %v1041_v42 = vpop.xlane.xlu0 %1040 }
 0x193   :  { %v1055_v44 = vsub.f32 %v409_v13, %v1041_v42  ;;  %1515 = vpow2.f32 %v1062_v45 }
 0x195   :  { %v1064_v46 = vmul.f32 1.442695, %v1055_v44 }
 0x197   :  { %1517 = vpow2.f32 %v1064_v46 }
 0x1a0   :  { %v1516_v57 = vpop.eup %1515 }
 0x1a4   :  { %v1518_v59 = vpop.eup %1517 }
 0x1c2   :  { %v928_v49 = vpop.f32.mrf.mxu0 }
 0x1c3   :  { %v929_v50 = vadd.f32 %v1140_v47, %v928_v49  ;;  %v1032_v51 = vpop.f32.mrf.mxu1 }
 0x1c4   :  { %v1033_v52 = vadd.f32 %v1141_v48, %v1032_v51  ;;  %v1424_v53 = vpop.f32.mrf.mxu0 }
 0x1c5   :  { %v1444_v54 = vpop.f32.mrf.mxu1  ;;  %1050 = vmax.xlane.f32.xlu0 %v929_v50 }
 0x1c6   :  { %1052 = vmax.xlane.f32.xlu1 %v1033_v52  ;;  %v931_v55 = vpop.f32.mrf.mxu0 }
 0x1c7   :  { %v1035_v56 = vpop.f32.mrf.mxu1 }
 0x1c8   :  { %v1425_v58 = vpop.f32.mrf.mxu0 }
 0x1c9   :  { %v1445_v60 = vpop.f32.mrf.mxu1  ;;  %1078 = vadd.xlane.f32.xlu0 %v1516_v57 }
 0x1ca   :  { %1080 = vadd.xlane.f32.xlu1 %v1518_v59 }
 0x1ce   :  { %v1043_v61 = vpop.xlane.xlu1 %1042 }
 0x1cf   :  { %v1056_v62 = vsub.f32 %v513_v19, %v1043_v61 }
 0x1d1   :  { %v1066_v63 = vmul.f32 1.442695, %v1056_v62 }
 0x1d2   :  { %v1045_v0 = vpop.xlane.xlu1 %1044 }
 0x1d3   :  { %1519 = vpow2.f32 %v1066_v63  ;;  %v1057_v2 = vsub.f32 %v617_v24, %v1045_v0 }
 0x1d5   :  { %v1068_v3 = vmul.f32 1.442695, %v1057_v2 }
 0x1d7   :  { %1521 = vpow2.f32 %v1068_v3 }
 0x1e0   :  { %v1520_v4 = vpop.eup %1519 }
 0x1e1   :  { %1082 = vadd.xlane.f32.xlu0 %v1520_v4 }
 0x1e4   :  { %v1522_v5 = vpop.eup %1521 }
 0x1e5   :  { %1084 = vadd.xlane.f32.xlu1 %v1522_v5 }
 0x20e   :  { %v1047_v6 = vpop.xlane.xlu0 %1046 }
 0x20f   :  { %v1049_v7 = vpop.xlane.xlu1 %1048  ;;  %v1058_v8 = vsub.f32 %v721_v31, %v1047_v6 }
 0x210   :  { %v1059_v1 = vsub.f32 %v825_v33, %v1049_v7 }
 0x211   :  { %v1070_v9 = vmul.f32 1.442695, %v1058_v8 }
 0x212   :  { %v1072_v10 = vmul.f32 1.442695, %v1059_v1 }
 0x213   :  { %1523 = vpow2.f32 %v1070_v9 }
 0x214   :  { %1525 = vpow2.f32 %v1072_v10 }
 0x220   :  { %v1524_v11 = vpop.eup %1523 }
 0x221   :  { %v1526_v12 = vpop.eup %1525  ;;  %1086 = vadd.xlane.f32.xlu0 %v1524_v11 }
 0x222   :  { %1088 = vadd.xlane.f32.xlu1 %v1526_v12 }
 0x24e   :  { %v1051_v13 = vpop.xlane.xlu0 %1050 }
 0x24f   :  { %v1053_v14 = vpop.xlane.xlu1 %1052  ;;  %v1060_v15 = vsub.f32 %v929_v50, %v1051_v13 }
 0x250   :  { %v1061_v16 = vsub.f32 %v1033_v52, %v1053_v14 }
 0x251   :  { %v1074_v17 = vmul.f32 1.442695, %v1060_v15 }
 0x252   :  { %v1076_v18 = vmul.f32 1.442695, %v1061_v16  ;;  %v1079_v36 = vpop.xlane.xlu0 %1078 }
 0x253   :  { %1527 = vpow2.f32 %v1074_v17  ;;  %v1081_v19 = vpop.xlane.xlu1 %1080 }
 0x254   :  { %1529 = vpow2.f32 %v1076_v18 }
 0x255   :  { %1531 = vrcp.f32 %v1081_v19 }
 0x256   :  { %1533 = vrcp.f32 %v1079_v36 }
 0x260   :  { %v1528_v20 = vpop.eup %1527 }
 0x261   :  { %v1530_v21 = vpop.eup %1529  ;;  %1090 = vadd.xlane.f32.xlu0 %v1528_v20 }
 0x262   :  { %v1532_v22 = vpop.eup %1531  ;;  %1092 = vadd.xlane.f32.xlu1 %v1530_v21 }
 0x263   :  { %v1534_v23 = vpop.eup %1533  ;;  %v1097_v24 = vmul.f32 %v1532_v22, %v1518_v59 }
 0x264   :  { %v1095_v25 = vmul.f32 %v1534_v23, %v1516_v57 }
 0x265   :  { %1111 = vst [vmem:[#allocation2 + $0x8] sm:$0xff] %v1097_v24 }
 0x266   :  { %1110 = vst [vmem:[#allocation2] sm:$0xff] %v1095_v25 }
 0x26a   :  { %v1083_v26 = vpop.xlane.xlu0 %1082 }
 0x26b   :  { %1535 = vrcp.f32 %v1083_v26 }
 0x26e   :  { %v1085_v27 = vpop.xlane.xlu1 %1084 }
 0x26f   :  { %1537 = vrcp.f32 %v1085_v27 }
 0x278   :  { %v1536_v28 = vpop.eup %1535 }
 0x279   :  { %v1099_v29 = vmul.f32 %v1536_v28, %v1520_v4 }
 0x27b   :  { %1112 = vst [vmem:[#allocation2 + $0x10] sm:$0xff] %v1099_v29 }
 0x27c   :  { %v1538_v30 = vpop.eup %1537 }
 0x27d   :  { %v1101_v31 = vmul.f32 %v1538_v30, %v1522_v5 }
 0x27f   :  { %1113 = vst [vmem:[#allocation2 + $0x18] sm:$0xff] %v1101_v31 }
 0x2aa   :  { %v1087_v32 = vpop.xlane.xlu0 %1086 }
 0x2ab   :  { %v1089_v33 = vpop.xlane.xlu1 %1088  ;;  %1539 = vrcp.f32 %v1087_v32 }
 0x2ac   :  { %1541 = vrcp.f32 %v1089_v33 }
 0x2b8   :  { %v1540_v34 = vpop.eup %1539 }
 0x2b9   :  { %v1542_v35 = vpop.eup %1541  ;;  %v1103_v37 = vmul.f32 %v1540_v34, %v1524_v11 }
 0x2ba   :  { %v1105_v38 = vmul.f32 %v1542_v35, %v1526_v12 }
 0x2bb   :  { %1114 = vst [vmem:[#allocation2 + $0x20] sm:$0xff] %v1103_v37 }
 0x2bc   :  { %1115 = vst [vmem:[#allocation2 + $0x28] sm:$0xff] %v1105_v38 }
 0x2ea   :  { %v1091_v39 = vpop.xlane.xlu0 %1090 }
 0x2eb   :  { %v1093_v40 = vpop.xlane.xlu1 %1092  ;;  %1543 = vrcp.f32 %v1091_v39 }
 0x2ec   :  { %1545 = vrcp.f32 %v1093_v40 }
 0x2f8   :  { %v1544_v41 = vpop.eup %1543 }
 0x2f9   :  { %v1546_v42 = vpop.eup %1545  ;;  %v1107_v43 = vmul.f32 %v1544_v41, %v1528_v20 }
 0x2fa   :  { %v1109_v44 = vmul.f32 %v1546_v42, %v1530_v21 }
 0x2fb   :  { %1116 = vst [vmem:[#allocation2 + $0x30] sm:$0xff] %v1107_v43 }
 0x2fc   :  { %1117 = vst [vmem:[#allocation2 + $0x38] sm:$0xff] %v1109_v44 }
 0x2fd   :  { %1558 = shalt.err (!%p1555_p4)
}
 0x2fe   :  { %s1572_s20 = smov 128   ;;  %s1573_s21 = smov 8  }
 0x2ff   :  { %1129 = dma.vmem_to_hbm [thread:$0]  %s1124_s18, 1024, %s1981_s3, [#allocation3], %s1572_s20, %s1572_s20, %s1573_s21  }
 0x300   :  { %1567 = dma.done.wait [#allocation3], 1024  }
 0x301   :  { %1568 = vsyncadd [#allocation3], 4294966272 }
 0x302   :  { %1133 = vsyncpa [#allocation3], 1 }

</bundles_post_ra>
